<compile_context>
chip_gen: v7x
topology: tpu7x:2x2x1
jax: 0.10.0
libtpu: 0.0.40
codegen_flags: <defaults>
</compile_context>

<pallas_src>
import numpy as np
import jax
import jax.numpy as jnp
from jax import lax
from jax.experimental import pallas as pl
from jax.experimental.pallas import tpu as pltpu


# ----------------------------------------------------------------------------
# Parameter setup (deterministic): replicate cv2.getGaussianKernel(ksize, sig)
# for sigma > 0:  g[i] = exp(-0.5*((i-(K-1)/2)/sigma)^2), normalized to sum 1.
# ----------------------------------------------------------------------------
def gaussian_kernel_1d(ksize: int, sigma: float) -> np.ndarray:
    x = np.arange(ksize, dtype=np.float64) - (ksize - 1) * 0.5
    k = np.exp(-0.5 * (x / sigma) ** 2)
    k /= k.sum()
    return k                                               # (K,)


def make_downsampler_weight(kernel_size: int = 9,
                            sig: float = 6.794574429554831) -> np.ndarray:
    """The 2-D kernel exactly as the PyTorch module builds it (for the ref)."""
    g = gaussian_kernel_1d(kernel_size, sig).reshape(kernel_size, 1)
    return np.multiply(g, g.T)                             # (K, K)


def _build_matrices(H, W, ksize, stride, padding, sig, T):
    """Banded matrices folding the 1-D taps, stride and zero padding.

    Per image:  out = Wv @ x @ Wh  ==  conv2d(x, g g^T, stride, padding).
    Whb is Wh replicated block-diagonally over the T images that sit
    side-by-side along the lane axis of the per-step slab.
    """
    g = gaussian_kernel_1d(ksize, sig)
    OH, OW = int(H / stride), int(W / stride)
    conv_oh = (H + 2 * padding - ksize) // stride + 1
    conv_ow = (W + 2 * padding - ksize) // stride + 1
    # The PyTorch module assigns the conv output into a (int(H/r), int(W/r))
    # buffer, so these must match (it would raise otherwise).  Guard it here.
    assert (conv_oh, conv_ow) == (OH, OW), (
        f"conv output {(conv_oh, conv_ow)} != int(H/ratio) {(OH, OW)}; this "
        "(kernel_size, stride, padding, H, W) combo is unsupported by the "
        "original module as well.")

    wv = np.zeros((OH, H), dtype=np.float64)
    for oy in range(OH):
        for ky in range(ksize):
            y = oy * stride + ky - padding
            if 0 <= y < H:                                 # out-of-range = zero pad
                wv[oy, y] += g[ky]

    wh = np.zeros((W, OW), dtype=np.float64)
    for ox in range(OW):
        for kx in range(ksize):
            xx = ox * stride + kx - padding
            if 0 <= xx < W:
                wh[xx, ox] += g[kx]

    whb = np.zeros((T * W, T * OW), dtype=np.float64)      # block diagonal
    for t in range(T):
        whb[t * W:(t + 1) * W, t * OW:(t + 1) * OW] = wh

    return (jnp.asarray(wv, dtype=jnp.float32),
            jnp.asarray(whb, dtype=jnp.float32))


# ----------------------------------------------------------------------------
# Pallas kernel: one chunk of T images per grid step, as two MXU matmuls.
#   x_ref:   (H, T*W)     -- T images side-by-side along lanes
#   wv_ref:  (OH, H)
#   whb_ref: (T*W, T*OW)  -- block-diagonal horizontal pass
#   o_ref:   (OH, T*OW)   -- lane-dense output slab
# ----------------------------------------------------------------------------
def _blur_downsample_kernel(x_ref, wv_ref, whb_ref, o_ref):
    x = x_ref[...].astype(jnp.float32)                     # cast in VMEM
    # Precision.HIGHEST keeps full f32 accuracy (needed for the 1e-5 check);
    # contraction lengths here are tiny so the extra MXU passes are free.
    t = jnp.dot(wv_ref[...], x,
                precision=lax.Precision.HIGHEST,
                preferred_element_type=jnp.float32)        # (OH, T*W) vertical
    o_ref[...] = jnp.dot(t, whb_ref[...],
                         precision=lax.Precision.HIGHEST,
                         preferred_element_type=jnp.float32)   # (OH, T*OW)


def downsampler_forward(x: jnp.ndarray,
                        factor: int,
                        kernel_size: int = 9,
                        padding: int = 0,
                        sig: float = 6.794574429554831,
                        images_per_step: int | None = None) -> jnp.ndarray:
    """Equivalent of Downsampler.forward: per-(batch, channel) 2D conv with the
    shared Gaussian kernel, stride=factor, output float32 of shape
    (B, C, int(H/factor), int(W/factor))."""
    B, C, H, W = x.shape
    s = int(factor)
    OH, OW = int(H / s), int(W / s)
    N = B * C
    # NOTE: the PyTorch module prints (row, col) here; host side-effect omitted.

    if images_per_step is None:
        # Enough images per step to fill lanes (T*OW >= ~128) / amortise the
        # per-step overhead, but capped so a large B*C still gives >=2 grid
        # steps (both v7x TensorCores fed via dimension_semantics="parallel").
        images_per_step = min(N, max(8, -(-128 // OW)))
    T = max(1, int(images_per_step))
    G = -(-N // T)                                          # grid steps
    Np = G * T

    wv, whb = _build_matrices(H, W, kernel_size, s, padding, sig, T)

    # Wrapper-side layout plumbing: (B,C,H,W) -> (G, H, T*W) slabs.
    x_bc = x.reshape(N, H, W)
    if Np != N:
        x_bc = jnp.concatenate(
            [x_bc, jnp.zeros((Np - N, H, W), dtype=x.dtype)], axis=0)
    x_slab = (x_bc.reshape(G, T, H, W)
                   .transpose(0, 2, 1, 3)                  # (G, H, T, W)
                   .reshape(G, H, T * W))

    itemsize = jnp.dtype(x.dtype).itemsize
    flops = 2 * G * (OH * H * (T * W) + OH * (T * W) * (T * OW))
    bytes_accessed = (G * H * T * W * itemsize             # input slabs
                      + (OH * H + T * W * T * OW) * 4      # weights
                      + G * OH * T * OW * 4)               # output slabs
    cost = pl.CostEstimate(flops=flops, transcendentals=0,
                           bytes_accessed=bytes_accessed)

    # Per-step VMEM footprint: double-buffered x & out blocks, (default
    # double-buffered) weights, f32 copies / intermediate.  Clamp to <=48 MiB
    # (safe on v7x's 64 MiB, ample headroom on v5e/v6e's 128 MiB).
    per_step = (2 * H * T * W * itemsize                   # x blocks (x2 bufs)
                + 2 * OH * T * OW * 4                      # out blocks (x2 bufs)
                + 2 * (OH * H + T * W * T * OW) * 4        # weights (x2 bufs)
                + (H * T * W + OH * T * W) * 4)            # f32 cast + intermediate
    vmem_limit = int(min(48 * 1024 * 1024,
                         max(16 * 1024 * 1024, 4 * per_step)))

    out_slab = pl.pallas_call(
        _blur_downsample_kernel,
        out_shape=jax.ShapeDtypeStruct((G, OH, T * OW), jnp.float32),
        grid=(G,),
        in_specs=[
            pl.BlockSpec((None, H, T * W), lambda g: (g, 0, 0)),  # chunk of T imgs
            pl.BlockSpec((OH, H), lambda g: (0, 0)),              # constant Wv
            pl.BlockSpec((T * W, T * OW), lambda g: (0, 0)),      # constant Whb
        ],
        out_specs=pl.BlockSpec((None, OH, T * OW), lambda g: (g, 0, 0)),
        compiler_params=pltpu.CompilerParams(
            dimension_semantics=("parallel",),             # shard chunks across TCs
            vmem_limit_bytes=vmem_limit,
        ),
        cost_estimate=cost,
    )(x_slab, wv, whb)

    # Undo the slab layout: (G, OH, T*OW) -> (B, C, OH, OW).
    out = (out_slab.reshape(G, OH, T, OW)
                   .transpose(0, 2, 1, 3)                  # (G, T, OH, OW)
                   .reshape(Np, OH, OW)[:N]
                   .reshape(B, C, OH, OW))
    return out                                             # float32, like torch.zeros


# ----------------------------------------------------------------------------
# Pure numpy reference (mirrors the F.conv2d stride=ratio loop in the module).
# ----------------------------------------------------------------------------
def _reference(x_np, k_np, factor, padding):
    B, C, H, W = x_np.shape
    K = k_np.shape[0]
    s = factor
    OH, OW = int(H / s), int(W / s)
    xp = np.pad(x_np.astype(np.float64),
                ((0, 0), (0, 0), (padding, padding), (padding, padding)))
    out = np.zeros((B, C, OH, OW), dtype=np.float64)
    for oy in range(OH):
        for ox in range(OW):
            patch = xp[:, :, oy * s:oy * s + K, ox * s:ox * s + K]
            out[:, :, oy, ox] = np.einsum('bchw,hw->bc', patch, k_np)
    return out.astype(np.float32)


if __name__ == "__main__":
    # Shapes consistent with the module's forward:
    # H=W=18, factor=3, kernel_size=9, padding=3 -> conv output 6x6 == int(18/3).
    factor, ksize, padding = 3, 9, 3
    sig = 6.794574429554831
    H = W = 18
    k2d = make_downsampler_weight(ksize, sig)

    key = jax.random.PRNGKey(0)
    k1, k2 = jax.random.split(key)

    # --- Test 1: toy shape, collapses to a single grid step --------------------
    B, C = 2, 4
    x = jax.random.normal(k1, (B, C, H, W), dtype=jnp.float32)
    y = jax.block_until_ready(
        downsampler_forward(x, factor, kernel_size=ksize, padding=padding, sig=sig))
    y_ref = _reference(np.asarray(x), k2d, factor, padding)
    assert y.shape == (B, C, int(H / factor), int(W / factor))
    assert y.dtype == jnp.float32
    np.testing.assert_allclose(np.asarray(y), y_ref, rtol=1e-5, atol=1e-5)

    # --- Test 2: more images than one chunk -> grid > 1 (chunked + ragged tail) -
    B2, C2 = 3, 6                                          # N=18, T=8 -> grid=3
    x2 = jax.random.normal(k2, (B2, C2, H, W), dtype=jnp.float32)
    y2 = jax.block_until_ready(
        downsampler_forward(x2, factor, kernel_size=ksize, padding=padding,
                            sig=sig, images_per_step=8))
    y2_ref = _reference(np.asarray(x2), k2d, factor, padding)
    np.testing.assert_allclose(np.asarray(y2), y2_ref, rtol=1e-5, atol=1e-5)

    print("KERNEL_OK")
</pallas_src>

<mosaic_0001>
module attributes {stable_mosaic.version = 11 : i64} {
  func.func @_blur_downsample_kernel(%arg0: i32, %arg1: memref<1x18x144xf32, #tpu.memory_space<vmem>>, %arg2: memref<6x18xf32, #tpu.memory_space<vmem>>, %arg3: memref<144x48xf32, #tpu.memory_space<vmem>>, %arg4: memref<1x6x48xf32, #tpu.memory_space<vmem>>) attributes {dimension_semantics = [#tpu.dimension_semantics<parallel>], iteration_bounds = array<i64: 1>, scalar_prefetch = 0 : i64, scratch_operands = 0 : i64, tpu.core_type = #tpu.core_type<tc>, window_params = [{transform_indices = @transform_0, window_bounds = array<i64: 1, 18, 144>}, {pipeline_mode = #tpu.pipeline_mode<synchronous>, transform_indices = @transform_1, window_bounds = array<i64: 6, 18>}, {pipeline_mode = #tpu.pipeline_mode<synchronous>, transform_indices = @transform_2, window_bounds = array<i64: 144, 48>}, {transform_indices = @transform_3, window_bounds = array<i64: 1, 6, 48>}]} {
    %c0 = arith.constant 0 : index
    %c0_0 = arith.constant 0 : index
    %c0_1 = arith.constant 0 : index
    %0 = vector.load %arg1[%c0, %c0_0, %c0_1] : memref<1x18x144xf32, #tpu.memory_space<vmem>>, vector<1x18x144xf32>
    %1 = vector.shape_cast %0 : vector<1x18x144xf32> to vector<18x144xf32>
    %c0_2 = arith.constant 0 : index
    %c0_3 = arith.constant 0 : index
    %2 = vector.load %arg2[%c0_2, %c0_3] : memref<6x18xf32, #tpu.memory_space<vmem>>, vector<6x18xf32>
    %cst = arith.constant dense<0.000000e+00> : vector<6x144xf32>
    %3 = tpu.matmul %2, %1, %cst {dimension_numbers = #tpu.dot_dimension_numbers<[1], [0], [0], [1], [0, 0, 1, 1], [], []>, precision = #tpu.contract_precision<fp32>} : vector<6x18xf32>, vector<18x144xf32>, vector<6x144xf32> -> vector<6x144xf32>
    %c0_4 = arith.constant 0 : index
    %c0_5 = arith.constant 0 : index
    %4 = vector.load %arg3[%c0_4, %c0_5] : memref<144x48xf32, #tpu.memory_space<vmem>>, vector<144x48xf32>
    %cst_6 = arith.constant dense<0.000000e+00> : vector<6x48xf32>
    %5 = tpu.matmul %3, %4, %cst_6 {dimension_numbers = #tpu.dot_dimension_numbers<[1], [0], [0], [1], [0, 0, 1, 1], [], []>, precision = #tpu.contract_precision<fp32>} : vector<6x144xf32>, vector<144x48xf32>, vector<6x48xf32> -> vector<6x48xf32>
    %c0_7 = arith.constant 0 : index
    %c0_8 = arith.constant 0 : index
    %c0_9 = arith.constant 0 : index
    %6 = vector.load %arg4[%c0_7, %c0_8, %c0_9] : memref<1x6x48xf32, #tpu.memory_space<vmem>>, vector<1x6x48xf32>
    %7 = vector.shape_cast %6 : vector<1x6x48xf32> to vector<6x48xf32>
    %8 = vector.shape_cast %5 : vector<6x48xf32> to vector<1x6x48xf32>
    tpu.vector_store %arg4[%c0_7, %c0_8, %c0_9], %8 {strides = array<i32>} : memref<1x6x48xf32, #tpu.memory_space<vmem>>, vector<1x6x48xf32>,
    return
  }
  func.func @transform_0(%arg0: i32) -> (i32, i32, i32) {
    %c0_i32 = arith.constant 0 : i32
    %c0_i32_0 = arith.constant 0 : i32
    %c0_i32_1 = arith.constant 0 : i32
    return %arg0, %c0_i32, %c0_i32_0 : i32, i32, i32
  }
  func.func @transform_1(%arg0: i32) -> (i32, i32) {
    %c0_i32 = arith.constant 0 : i32
    %c0_i32_0 = arith.constant 0 : i32
    %c0_i32_1 = arith.constant 0 : i32
    return %c0_i32, %c0_i32_0 : i32, i32
  }
  func.func @transform_2(%arg0: i32) -> (i32, i32) {
    %c0_i32 = arith.constant 0 : i32
    %c0_i32_0 = arith.constant 0 : i32
    %c0_i32_1 = arith.constant 0 : i32
    return %c0_i32, %c0_i32_0 : i32, i32
  }
  func.func @transform_3(%arg0: i32) -> (i32, i32, i32) {
    %c0_i32 = arith.constant 0 : i32
    %c0_i32_0 = arith.constant 0 : i32
    %c0_i32_1 = arith.constant 0 : i32
    return %arg0, %c0_i32, %c0_i32_0 : i32, i32, i32
  }
}

</mosaic_0001>

<bundles_post_ra>
// kernel: tpu_custom_call.1
= control target key start
LH: loop header
LB: loop body
LE: loop exit
PB: predicated region body
PF: predicated region fallthrough
CT: control target
= control target key end

     0   :  { %vm25_vm0 = vcmask 1041408   ;;  %v1464_v3 = vmov 0.0   ;;  %vm21_vm1 = vcmask 146432   ;;  %v1465_v4 = vmov 0.0|0.0   ;;  %s2014_s0 = inlined_call_operand.vmem [shape: f32[1,18,144], index: 0, kind: input, shape index: {}]   ;;  %s2015_s1 = inlined_call_operand.vmem [shape: f32[6,18], index: 1, kind: input, shape index: {}]   ;;  %s2016_s2 = inlined_call_operand.vmem [shape: f32[144,48], index: 2, kind: input, shape index: {}]   ;;  %s2017_s3 = inlined_call_operand.vmem [shape: f32[1,6,48], index: 3, kind: output, shape index: {}]  }
   0x1   :  { %v15_v0 = vld [vmem:[%s2014_s0 + $0x8] sm:$0xff]  ;;  %v17_v1 = vld [vmem:[%s2014_s0 + $0x18] sm:$0xff]  ;;  %v14_v2 = vld [vmem:[%s2014_s0] sm:$0xff]  ;;  %102 = vmatprep.mubr.f32.mxu0 %v1464_v3  ;;  %1335 = vmatprep.subr.bf16.mxu1 %v1465_v4  ;;  %vm567_vm2 = vcmask 130048   ;;  %vm1251_vm3 = vcmask 390144  }
   0x2   :  { %v32_v5 = vand.u32 4294901760, %v15_v0  ;;  %v36_v6 = vand.u32 4294901760, %v17_v1  ;;  %v16_v7 = vld [vmem:[%s2014_s0 + $0x10] sm:$0xff]  ;;  %v34_v8 = vand.u32 4294901760, %v14_v2  ;;  %v19_v9 = vld [vmem:[%s2014_s0 + $0x28] sm:$0x3] }
   0x3   :  { %v38_v10 = vand.u32 4294901760, %v16_v7  ;;  %v30_v11 = vsel %vm25_vm0, %v19_v9, 0  ;;  %v18_v12 = vld [vmem:[%s2014_s0 + $0x20] sm:$0x3]  ;;  %v1573_v45 = vld [vmem:[%s2016_s2 + $0x8] sm:$0xff]  ;;  %v1578_v46 = vld [vmem:[%s2016_s2 + $0x10] sm:$0xff] }
   0x4   :  { %v20_v13 = vld [vmem:[%s2015_s1] sm:$0x3f]  ;;  %v1510_v14 = vpack.c.bf16 %v36_v6, %v32_v5  ;;  %v1512_v15 = vsub.f32 %v15_v0, %v32_v5  ;;  %v1514_v16 = vsub.f32 %v17_v1, %v36_v6  ;;  %v1516_v17 = vsub.f32 %v14_v2, %v34_v8  ;;  %v1583_v47 = vld [vmem:[%s2016_s2 + $0x18] sm:$0xff]  ;;  %v1593_v50 = vld [vmem:[%s2016_s2 + $0x28] sm:$0xff] }
   0x5   :  { %v1518_v18 = vpack.c.bf16 %v38_v10, %v34_v8  ;;  %v1520_v19 = vsub.f32 %v16_v7, %v38_v10  ;;  %v1522_v20 = vand.u32 4294901760, %v30_v11  ;;  %v27_v21 = vsel %vm25_vm0, %v18_v12, 0  ;;  %v1563_v40 = vld [vmem:[%s2016_s2] sm:$0xff]  ;;  %v1630_v2 = vld [vmem:[%s2016_s2 + $0x30] sm:$0xff]  ;;  %v1635_v5 = vld [vmem:[%s2016_s2 + $0x38] sm:$0xff] }
   0x6   :  { %1258 = vmatprep.subr.bf16.mxu0 %v1510_v14  ;;  %v1526_v22 = vand.u32 4294901760, %v27_v21  ;;  %v23_v23 = vsel %vm21_vm1, %v20_v13, 0  ;;  %v116_v24 = vand.u32 4294901760, %v1512_v15  ;;  %v128_v25 = vand.u32 4294901760, %v1514_v16  ;;  %v1588_v49 = vld [vmem:[%s2016_s2 + $0x20] sm:$0xff] }
   0x7   :  { %1260 = vmatpush1.bf16.msra.mxu0 %v1518_v18  ;;  %v1532_v26 = vand.u32 4294901760, %v23_v23  ;;  %v122_v27 = vand.u32 4294901760, %v1516_v17  ;;  %v134_v28 = vand.u32 4294901760, %v1520_v19  ;;  %v1537_v29 = vsub.f32 %v30_v11, %v1522_v20 }
   0x8   :  { %41 = vmatprep.subr.mxu0 %v1522_v20  ;;  %v1541_v30 = vsub.f32 %v27_v21, %v1526_v22  ;;  %v117_v31 = vsub.f32 %v1512_v15, %v116_v24  ;;  %v129_v32 = vsub.f32 %v1514_v16, %v128_v25  ;;  %v572_v54 = vand.u32 4294901760, %v1563_v40  ;;  %v1660_v21 = vld [vmem:[%s2016_s2 + $0x40] sm:$0xff] }
   0x9   :  { %v1550_v33 = vsub.f32 %v23_v23, %v1532_v26  ;;  %v123_v34 = vsub.f32 %v1516_v17, %v122_v27  ;;  %v135_v35 = vsub.f32 %v1520_v19, %v134_v28  ;;  %v140_v36 = vand.u32 4294901760, %v1537_v29  ;;  %v1665_v23 = vld [vmem:[%s2016_s2 + $0x48] sm:$0xff] }
   0xa   :  { %v118_v37 = vand.u32 4294901760, %v117_v31  ;;  %v130_v38 = vand.u32 4294901760, %v129_v32  ;;  %v146_v39 = vand.u32 4294901760, %v1541_v30  ;;  %v575_v56 = vand.u32 4294901760, %v1573_v45 }
   0xb   :  { %43 = vmatpush1.msra.mxu0 %v1526_v22  ;;  %v105_v41 = vand.u32 4294901760, %v1550_v33  ;;  %v124_v42 = vand.u32 4294901760, %v123_v34  ;;  %v136_v43 = vand.u32 4294901760, %v135_v35  ;;  %v141_v44 = vsub.f32 %v1537_v29, %v140_v36 }
   0xc   :  { %v1261_v48 = vpack.c.bf16 %v130_v38, %v118_v37  ;;  %v147_v53 = vsub.f32 %v1541_v30, %v146_v39  ;;  %v578_v57 = vand.u32 4294901760, %v1578_v46  ;;  %v581_v58 = vand.u32 4294901760, %v1583_v47 }
   0xd   :  { %v106_v51 = vsub.f32 %v1550_v33, %v105_v41  ;;  %v1263_v52 = vpack.c.bf16 %v136_v43, %v124_v42  ;;  %v142_v55 = vand.u32 4294901760, %v141_v44  ;;  %v1608_v60 = vsub.f32 %v1563_v40, %v572_v54  ;;  %v1686_v42 = vld [vmem:[%s2016_s2 + $0x50] sm:$0xff]  ;;  %v1693_v43 = vld [vmem:[%s2016_s2 + $0x58] sm:$0xff] }
   0xe   :  { %1262 = vmatprep.subr.bf16.mxu0 %v1261_v48  ;;  %v584_v61 = vand.u32 4294901760, %v1588_v49  ;;  %v587_v62 = vand.u32 4294901760, %v1593_v50  ;;  %v1615_v63 = vsub.f32 %v1573_v45, %v575_v56  ;;  %v1620_v0 = vsub.f32 %v1578_v46, %v578_v57 }
   0xf   :  { %v107_v59 = vand.u32 4294901760, %v106_v51  ;;  %v1625_v1 = vsub.f32 %v1583_v47, %v581_v58  ;;  %v148_v6 = vand.u32 4294901760, %v147_v53  ;;  %v1265_v8 = vpack.c.bf16 %v1514_v16, %v1512_v15 }
  0x10   :  { %v1336_v7 = vpack.c.bf16 %v1615_v63, %v1608_v60  ;;  %v1645_v9 = vsub.f32 %v1588_v49, %v584_v61  ;;  %v1650_v10 = vsub.f32 %v1593_v50, %v587_v62  ;;  %v590_v12 = vand.u32 4294901760, %v1630_v2 }
  0x11   :  { %108 = vmatmul.mubr.f32.vlgmr.msra.gmra.mrb[0].mxu0 %v107_v59  ;;  %v1339_v11 = vpack.c.bf16 %v1625_v1, %v1620_v0  ;;  %v593_v13 = vand.u32 4294901760, %v1635_v5  ;;  %v1267_v31 = vpack.c.bf16 %v1520_v19, %v1516_v17  ;;  %v596_v37 = vand.u32 4294901760, %v1660_v21  ;;  %v1720_v59 = vld [vmem:[%s2016_s2 + $0x68] sm:$0xff] }
  0x12   :  { %1264 = vmatpush1.bf16.msra.mxu0 %v1263_v52  ;;  %208 = vmatprep.mubr.f32.mxu0 %v1464_v3  ;;  %v1342_v32 = vpack.c.bf16 %v1650_v10, %v1645_v9  ;;  %v1674_v34 = vsub.f32 %v1630_v2, %v590_v12  ;;  %v599_v38 = vand.u32 4294901760, %v1665_v23  ;;  %v2018_v44 = vand.u32 4294901760, %v1686_v42 }
  0x13   :  { %143 = vmatprep.subr.mxu0 %v142_v55  ;;  %1337 = vmatpush1.bf16.msra.mxu1 %v1336_v7  ;;  %v1679_v35 = vsub.f32 %v1635_v5, %v593_v13  ;;  %v1703_v51 = vsub.f32 %v1660_v21, %v596_v37  ;;  %v605_v53 = vand.u32 4294901760, %v1693_v43  ;;  %v1714_v55 = vld [vmem:[%s2016_s2 + $0x60] sm:$0xff]  ;;  %v1275_v15 = vpack.c.bf16 %v134_v28, %v122_v27 }
  0x14   :  { %1338 = vmatprep.subr.bf16.mxu1 %v1465_v4  ;;  %v1708_v52 = vsub.f32 %v1665_v23, %v599_v38  ;;  %v1784_v17 = vpack.c.bf16 %v575_v56, %v572_v54  ;;  %v1817_v19 = vpack.c.bf16 %v599_v38, %v596_v37 }
  0x15   :  { %v1345_v48 = vpack.c.bf16 %v1679_v35, %v1674_v34 }
  0x16   :  { %149 = vmatpush1.msra.mxu0 %v148_v6  ;;  %v608_v6 = vand.u32 4294901760, %v1714_v55  ;;  %v1348_v7 = vpack.c.bf16 %v1708_v52, %v1703_v51 }
  0x17   :  { %1266 = vmatprep.subr.bf16.mxu0 %v1265_v8  ;;  %1340 = vmatpush1.bf16.msra.mxu1 %v1339_v11  ;;  %v1730_v8 = vsub.f32 %v1686_v42, %v2018_v44  ;;  %v1733_v11 = vsub.f32 %v1693_v43, %v605_v53 }
  0x18   :  { %1341 = vmatprep.subr.bf16.mxu1 %v1465_v4 }
  0x19   :  { %210 = vmatmul.mubr.f32.vlgmr.msra.gmra.mrb[0].mxu0 %v1532_v26  ;;  %v1351_v43 = vpack.c.bf16 %v1733_v11, %v1730_v8 }
  0x1a   :  { %1268 = vmatpush1.bf16.msra.mxu0 %v1267_v31  ;;  %292 = vmatprep.mubr.f32.mxu0 %v1464_v3  ;;  %v611_v31 = vand.u32 4294901760, %v1720_v59 }
  0x1b   :  { %230 = vmatprep.subr.mxu0 %v1537_v29  ;;  %1343 = vmatpush1.bf16.msra.mxu1 %v1342_v32  ;;  %v1273_v32 = vpack.c.bf16 %v128_v25, %v116_v24  ;;  %v563_v24 = vld [vmem:[%s2016_s2 + $0x70] sm:$0xff]  ;;  %v564_v25 = vld [vmem:[%s2016_s2 + $0x78] sm:$0xff] }
  0x1c   :  { %1344 = vmatprep.subr.bf16.mxu1 %v1465_v4  ;;  %v1755_v44 = vsub.f32 %v1720_v59, %v611_v31  ;;  %v617_v27 = vand.u32 4294901760, %v564_v25  ;;  %v679_v59 = vand.u32 4294901760, %v1615_v63 }
  0x1e   :  { %233 = vmatpush1.msra.mxu0 %v1541_v30  ;;  %v776_v29 = vsub.f32 %v564_v25, %v617_v27  ;;  %v565_v30 = vld [vmem:[%s2016_s2 + $0x80] sm:$0xff]  ;;  %v693_v25 = vand.u32 4294901760, %v1625_v1 }
  0x1f   :  { %1270 = vmatprep.subr.bf16.mxu0 %v1510_v14  ;;  %1346 = vmatpush1.bf16.msra.mxu1 %v1345_v48  ;;  %v1750_v48 = vsub.f32 %v1714_v55, %v608_v6  ;;  %v672_v55 = vand.u32 4294901760, %v1608_v60 }
  0x20   :  { %1347 = vmatprep.subr.bf16.mxu1 %v1465_v4  ;;  %v777_v56 = vand.u32 4294901760, %v776_v29 }
  0x21   :  { %295 = vmatmul.mubr.f32.vlgmr.msra.gmra.mrb[0].mxu0 %v1550_v33  ;;  %v1354_v16 = vpack.c.bf16 %v1755_v44, %v1750_v48  ;;  %v566_v33 = vld [vmem:[%s2016_s2 + $0x88] sm:$0xff] }
  0x22   :  { %1272 = vmatpush1.bf16.msra.mxu0 %v1518_v18  ;;  %371 = vmatprep.mubr.f32.mxu0 %v1464_v3  ;;  %v623_v40 = vand.u32 4294901760, %v566_v33 }
  0x23   :  { %310 = vmatprep.subr.mxu0 %v1522_v20  ;;  %1349 = vmatpush1.bf16.msra.mxu1 %v1348_v7 }
  0x24   :  { %1350 = vmatprep.subr.bf16.mxu1 %v1465_v4  ;;  %v790_v46 = vsub.f32 %v566_v33, %v623_v40 }
  0x26   :  { %312 = vmatpush1.msra.mxu0 %v1526_v22  ;;  %v791_v5 = vand.u32 4294901760, %v790_v46 }
  0x27   :  { %1274 = vmatprep.subr.bf16.mxu0 %v1273_v32  ;;  %1352 = vmatpush1.bf16.msra.mxu1 %v1351_v43  ;;  %v673_v43 = vsub.f32 %v1608_v60, %v672_v55 }
  0x28   :  { %1353 = vmatprep.subr.bf16.mxu1 %v1465_v4  ;;  %v792_v21 = vsub.f32 %v790_v46, %v791_v5 }
  0x29   :  { %375 = vmatmul.mubr.f32.vlgmr.msra.gmra.mrb[0].mxu0 %v105_v41  ;;  %v1844_v41 = vpack.c.bf16 %v611_v31, %v608_v6 }
  0x2a   :  { %1276 = vmatpush1.bf16.msra.mxu0 %v1275_v15  ;;  %463 = vmatprep.mubr.f32.mxu0 %v1464_v3  ;;  %v793_v37 = vand.u32 4294901760, %v792_v21  ;;  %v680_v15 = vsub.f32 %v1615_v63, %v679_v59 }
  0x2b   :  { %400 = vmatprep.subr.mxu0 %v140_v36  ;;  %1355 = vmatpush1.bf16.msra.mxu1 %v1354_v16  ;;  %v686_v16 = vand.u32 4294901760, %v1620_v0 }
  0x2c   :  { %1356 = vmatprep.subr.bf16.mxu1 %v1465_v4 }
  0x2d   :  { %v1393_v60 = vpack.c.bf16 %v693_v25, %v686_v16 }
  0x2e   :  { %404 = vmatpush1.msra.mxu0 %v146_v39  ;;  %v620_v39 = vand.u32 4294901760, %v565_v30 }
  0x2f   :  { %1278 = vmatprep.subr.bf16.mxu0 %v1510_v14  ;;  %v1801_v14 = vpack.c.bf16 %v587_v62, %v584_v61 }
  0x30   :  { %v783_v45 = vsub.f32 %v565_v30, %v620_v39  ;;  %v1854_v50 = vpack.c.bf16 %v623_v40, %v620_v39  ;;  %v687_v30 = vsub.f32 %v1620_v0, %v686_v16  ;;  %v700_v39 = vand.u32 4294901760, %v1645_v9 }
  0x31   :  { %465 = vmatmul.mubr.f32.vlgmr.msra.gmra.mrb[0].mxu0 %v1532_v26  ;;  %v707_v40 = vand.u32 4294901760, %v1650_v10 }
  0x32   :  { %1280 = vmatpush1.bf16.msra.mxu0 %v1518_v18  ;;  %541 = vmatprep.mubr.f32.mxu0 %v1464_v3  ;;  %v1793_v3 = vpack.c.bf16 %v581_v58, %v578_v57  ;;  %v1809_v18 = vpack.c.bf16 %v593_v13, %v590_v12  ;;  %v1360_v47 = vpack.c.bf16 %v790_v46, %v783_v45  ;;  %v784_v2 = vand.u32 4294901760, %v783_v45 }
  0x33   :  { %480 = vmatprep.subr.mxu0 %v1522_v20  ;;  %v2019_v20 = vand.u32 4294901760, %v1686_v42  ;;  %v778_v58 = vsub.f32 %v776_v29, %v777_v56  ;;  %v1396_v63 = vpack.c.bf16 %v707_v40, %v700_v39 }
  0x34   :  { %v785_v13 = vsub.f32 %v783_v45, %v784_v2 }
  0x35   :  { %v779_v62 = vand.u32 4294901760, %v778_v58 }
  0x36   :  { %482 = vmatpush1.msra.mxu0 %v1526_v22  ;;  %v1823_v22 = vpack.c.bf16 %v605_v53, %v2019_v20  ;;  %v786_v23 = vand.u32 4294901760, %v785_v13  ;;  %v1864_v53 = vpack.c.bf16 %v791_v5, %v784_v2  ;;  %v708_v2 = vsub.f32 %v1650_v10, %v707_v40 }
  0x37   :  { %1281 = vmatprep.subr.bf16.mxu0 %v1465_v4 }
  0x38   :  { %v1860_v38 = vpack.c.bf16 %v793_v37, %v786_v23  ;;  %v728_v23 = vand.u32 4294901760, %v1703_v51  ;;  %v735_v37 = vand.u32 4294901760, %v1708_v52 }
  0x39   :  { %543 = vmatmul.mubr.f32.vlgmr.msra.gmra.mrb[0].mxu0 %v1532_v26  ;;  %v614_v26 = vand.u32 4294901760, %v563_v24 }
  0x3a   :  { %1283 = vmatpush1.bf16.msra.mxu0 %v1784_v17 }
  0x3b   :  { %1284 = vmatprep.subr.bf16.mxu0 %v1465_v4  ;;  %v769_v28 = vsub.f32 %v563_v24, %v614_v26  ;;  %v1849_v49 = vpack.c.bf16 %v617_v27, %v614_v26 }
  0x3d   :  { %v1357_v36 = vpack.c.bf16 %v776_v29, %v769_v28  ;;  %v770_v54 = vand.u32 4294901760, %v769_v28  ;;  %v681_v29 = vand.u32 4294901760, %v680_v15 }
  0x3e   :  { %1286 = vmatpush1.bf16.msra.mxu0 %v1793_v3 }
  0x3f   :  { %1287 = vmatprep.subr.bf16.mxu0 %v1465_v4  ;;  %1358 = vmatpush1.bf16.msra.mxu1 %v1357_v36  ;;  %v771_v57 = vsub.f32 %v769_v28, %v770_v54  ;;  %v1862_v42 = vpack.c.bf16 %v777_v56, %v770_v54  ;;  %v674_v28 = vand.u32 4294901760, %v673_v43  ;;  %v694_v36 = vsub.f32 %v1625_v1, %v693_v25 }
  0x40   :  { %1359 = vmatprep.subr.bf16.mxu1 %v1465_v4  ;;  %v688_v54 = vand.u32 4294901760, %v687_v30  ;;  %v714_v56 = vand.u32 4294901760, %v1674_v34  ;;  %v742_v30 = vand.u32 4294901760, %v1730_v8  ;;  %v1402_v1 = vpack.c.bf16 %v735_v37, %v728_v23 }
  0x41   :  { %v772_v61 = vand.u32 4294901760, %v771_v57  ;;  %v721_v57 = vand.u32 4294901760, %v1679_v35 }
  0x42   :  { %1289 = vmatpush1.bf16.msra.mxu0 %v1801_v14  ;;  %v715_v13 = vsub.f32 %v1674_v34, %v714_v56 }
  0x43   :  { %1290 = vmatprep.subr.bf16.mxu0 %v1465_v4  ;;  %1361 = vmatpush1.bf16.msra.mxu1 %v1360_v47  ;;  %v1858_v12 = vpack.c.bf16 %v779_v62, %v772_v61  ;;  %v1309_v47 = vpack.c.bf16 %v681_v29, %v674_v28  ;;  %v695_v61 = vand.u32 4294901760, %v694_v36  ;;  %v701_v62 = vsub.f32 %v1645_v9, %v700_v39 }
  0x44   :  { %1362 = vmatprep.subr.bf16.mxu1 %v1465_v4  ;;  %v722_v21 = vsub.f32 %v1679_v35, %v721_v57  ;;  %v716_v43 = vand.u32 4294901760, %v715_v13  ;;  %v736_v28 = vsub.f32 %v1708_v52, %v735_v37  ;;  %v1399_v0 = vpack.c.bf16 %v721_v57, %v714_v56 }
  0x46   :  { %1292 = vmatpush1.bf16.msra.mxu0 %v1809_v18  ;;  %v723_v15 = vand.u32 4294901760, %v722_v21 }
  0x47   :  { %1293 = vmatprep.subr.bf16.mxu0 %v1465_v4 }
  0x48   :  { %v1318_v36 = vpack.c.bf16 %v723_v15, %v716_v43 }
  0x4a   :  { %1295 = vmatpush1.bf16.msra.mxu0 %v1817_v19 }
  0x4b   :  { %1296 = vmatprep.subr.bf16.mxu0 %v1465_v4 }
  0x4e   :  { %1298 = vmatpush1.bf16.msra.mxu0 %v1823_v22 }
  0x4f   :  { %1299 = vmatprep.subr.bf16.mxu0 %v1465_v4 }
  0x52   :  { %1301 = vmatpush1.bf16.msra.mxu0 %v1844_v41 }
  0x53   :  { %1302 = vmatprep.subr.bf16.mxu0 %v1465_v4 }
  0x56   :  { %1304 = vmatpush1.bf16.msra.mxu0 %v1849_v49 }
  0x57   :  { %1305 = vmatprep.subr.bf16.mxu0 %v1465_v4 }
  0x5a   :  { %1307 = vmatpush1.bf16.msra.mxu0 %v1854_v50 }
  0x5b   :  { %1308 = vmatprep.subr.bf16.mxu0 %v1465_v4 }
 0x10c   :  { %v544_v6 = vpop.f32.mrb[0].mxu0 }
 0x10d   :  { %v1868_v7 = vand.u32 4294901760, %v544_v6  ;;  %v546_v31 = vpop.f32.mrb[1].mxu0 }
 0x10e   :  { %v569_v32 = vsel %vm567_vm2, %v546_v31, 0  ;;  %v702_v31 = vand.u32 4294901760, %v701_v62 }
 0x10f   :  { %v1878_v20 = vsub.f32 %v544_v6, %v1868_v7  ;;  %v1880_v24 = vand.u32 4294901760, %v569_v32  ;;  %v1312_v6 = vpack.c.bf16 %v695_v61, %v688_v54  ;;  %v763_v61 = vand.u32 4294901760, %v1755_v44 }
 0x111   :  { %v661_v26 = vand.u32 4294901760, %v1878_v20  ;;  %v654_v27 = vsub.f32 %v569_v32, %v1880_v24  ;;  %v709_v32 = vand.u32 4294901760, %v708_v2 }
 0x113   :  { %933 = vmatprep.mubr.f32.mxu1 %v654_v27  ;;  %v655_v33 = vand.u32 4294901760, %v654_v27  ;;  %v662_v45 = vsub.f32 %v1878_v20, %v661_v26  ;;  %v1315_v29 = vpack.c.bf16 %v709_v32, %v702_v31 }
 0x114   :  { %936 = vmatmul.mubr.f32.vlgmr.msra.gmra.mrb[0].mxu1 %v1878_v20 }
 0x115   :  { %1364 = vmatpush1.bf16.msra.mxu1 %v1784_v17  ;;  %1026 = vmatprep.mubr.f32.mxu1 %v655_v33  ;;  %v656_v46 = vsub.f32 %v654_v27, %v655_v33  ;;  %v663_v5 = vand.u32 4294901760, %v662_v45  ;;  %v729_v27 = vsub.f32 %v1703_v51, %v728_v23  ;;  %v749_v33 = vand.u32 4294901760, %v1733_v11 }
 0x116   :  { %1365 = vmatprep.subr.bf16.mxu1 %v1465_v4 }
 0x117   :  { %v657_v58 = vand.u32 4294901760, %v656_v46  ;;  %v730_v45 = vand.u32 4294901760, %v729_v27  ;;  %v737_v46 = vand.u32 4294901760, %v736_v28  ;;  %v750_v54 = vsub.f32 %v1733_v11, %v749_v33 }
 0x118   :  { %v1405_v9 = vpack.c.bf16 %v749_v33, %v742_v30 }
 0x119   :  { %1367 = vmatpush1.bf16.msra.mxu1 %v1793_v3  ;;  %658 = vmatprep.mubr.f32.mxu0 %v657_v58  ;;  %v756_v58 = vand.u32 4294901760, %v1750_v48  ;;  %v1321_v62 = vpack.c.bf16 %v737_v46, %v730_v45 }
 0x11a   :  { %664 = vmatmul.mubr.f32.vlgmr.msra.gmra.mrb[2].mxu0 %v663_v5  ;;  %1368 = vmatprep.subr.bf16.mxu1 %v1465_v4  ;;  %v751_v5 = vand.u32 4294901760, %v750_v54 }
 0x11b   :  { %1310 = vmatpush1.bf16.msra.mxu0 %v1309_v47  ;;  %824 = vmatprep.mubr.f32.mxu0 %v1880_v24  ;;  %v743_v47 = vsub.f32 %v1730_v8, %v742_v30  ;;  %v757_v13 = vsub.f32 %v1750_v48, %v756_v58  ;;  %v764_v8 = vsub.f32 %v1755_v44, %v763_v61 }
 0x11c   :  { %1311 = vmatprep.subr.bf16.mxu0 %v1465_v4  ;;  %v1390_v44 = vpack.c.bf16 %v679_v59, %v672_v55  ;;  %v1408_v10 = vpack.c.bf16 %v763_v61, %v756_v58 }
 0x11d   :  { %1370 = vmatpush1.bf16.msra.mxu1 %v1801_v14  ;;  %v744_v2 = vand.u32 4294901760, %v743_v47  ;;  %v758_v21 = vand.u32 4294901760, %v757_v13 }
 0x11e   :  { %1371 = vmatprep.subr.bf16.mxu1 %v1465_v4 }
 0x11f   :  { %1313 = vmatpush1.bf16.msra.mxu0 %v1312_v6  ;;  %v1324_v11 = vpack.c.bf16 %v751_v5, %v744_v2  ;;  %v765_v6 = vand.u32 4294901760, %v764_v8 }
 0x120   :  { %1314 = vmatprep.subr.bf16.mxu0 %v1465_v4 }
 0x121   :  { %1373 = vmatpush1.bf16.msra.mxu1 %v1809_v18  ;;  %v1327_v48 = vpack.c.bf16 %v765_v6, %v758_v21 }
 0x122   :  { %1374 = vmatprep.subr.bf16.mxu1 %v1465_v4 }
 0x123   :  { %1316 = vmatpush1.bf16.msra.mxu0 %v1315_v29 }
 0x124   :  { %1317 = vmatprep.subr.bf16.mxu0 %v1465_v4 }
 0x125   :  { %1376 = vmatpush1.bf16.msra.mxu1 %v1817_v19 }
 0x126   :  { %1377 = vmatprep.subr.bf16.mxu1 %v1465_v4 }
 0x127   :  { %1319 = vmatpush1.bf16.msra.mxu0 %v1318_v36 }
 0x128   :  { %1320 = vmatprep.subr.bf16.mxu0 %v1465_v4 }
 0x129   :  { %1379 = vmatpush1.bf16.msra.mxu1 %v1823_v22 }
 0x12a   :  { %1380 = vmatprep.subr.bf16.mxu1 %v1465_v4 }
 0x12b   :  { %1322 = vmatpush1.bf16.msra.mxu0 %v1321_v62 }
 0x12c   :  { %1323 = vmatprep.subr.bf16.mxu0 %v1465_v4 }
 0x12d   :  { %1382 = vmatpush1.bf16.msra.mxu1 %v1844_v41 }
 0x12e   :  { %1383 = vmatprep.subr.bf16.mxu1 %v1465_v4 }
 0x12f   :  { %1325 = vmatpush1.bf16.msra.mxu0 %v1324_v11 }
 0x130   :  { %1326 = vmatprep.subr.bf16.mxu0 %v1465_v4 }
 0x131   :  { %1385 = vmatpush1.bf16.msra.mxu1 %v1849_v49 }
 0x132   :  { %1386 = vmatprep.subr.bf16.mxu1 %v1465_v4 }
 0x133   :  { %1328 = vmatpush1.bf16.msra.mxu0 %v1327_v48 }
 0x134   :  { %1329 = vmatprep.subr.bf16.mxu0 %v1465_v4 }
 0x135   :  { %1388 = vmatpush1.bf16.msra.mxu1 %v1854_v50 }
 0x136   :  { %1389 = vmatprep.subr.bf16.mxu1 %v1465_v4 }
 0x137   :  { %1331 = vmatpush1.bf16.msra.mxu0 %v1858_v12 }
 0x138   :  { %1030 = vmatmul.mubr.f32.vlgmr.msra.gmra.mrb[0].mxu1 %v661_v26  ;;  %1332 = vmatprep.subr.bf16.mxu0 %v1465_v4 }
 0x139   :  { %1391 = vmatpush1.bf16.msra.mxu1 %v1390_v44  ;;  %1154 = vmatprep.mubr.f32.mxu1 %v1880_v24 }
 0x13a   :  { %1392 = vmatprep.subr.bf16.mxu1 %v1465_v4 }
 0x13b   :  { %1334 = vmatpush1.bf16.msra.mxu0 %v1860_v38 }
 0x13d   :  { %1394 = vmatpush1.bf16.msra.mxu1 %v1393_v60 }
 0x13e   :  { %826 = vmatmul.mubr.f32.vlgmr.msra.gmra.mrb[2].mxu0 %v1868_v7  ;;  %1395 = vmatprep.subr.bf16.mxu1 %v1465_v4 }
 0x141   :  { %1397 = vmatpush1.bf16.msra.mxu1 %v1396_v63 }
 0x142   :  { %1398 = vmatprep.subr.bf16.mxu1 %v1465_v4 }
 0x145   :  { %1400 = vmatpush1.bf16.msra.mxu1 %v1399_v0 }
 0x146   :  { %1401 = vmatprep.subr.bf16.mxu1 %v1465_v4 }
 0x149   :  { %1403 = vmatpush1.bf16.msra.mxu1 %v1402_v1 }
 0x14a   :  { %1404 = vmatprep.subr.bf16.mxu1 %v1465_v4 }
 0x14d   :  { %1406 = vmatpush1.bf16.msra.mxu1 %v1405_v9 }
 0x14e   :  { %1407 = vmatprep.subr.bf16.mxu1 %v1465_v4 }
 0x151   :  { %1409 = vmatpush1.bf16.msra.mxu1 %v1408_v10 }
 0x152   :  { %1410 = vmatprep.subr.bf16.mxu1 %v1465_v4 }
 0x155   :  { %1412 = vmatpush1.bf16.msra.mxu1 %v1862_v42 }
 0x156   :  { %1413 = vmatprep.subr.bf16.mxu1 %v1465_v4 }
 0x159   :  { %1415 = vmatpush1.bf16.msra.mxu1 %v1864_v53 }
 0x15a   :  { %1416 = vmatprep.subr.bf16.mxu1 %v1465_v4 }
 0x15c   :  { %1156 = vmatmul.mubr.f32.vlgmr.msra.gmra.mrb[0].mxu1 %v1868_v7 }
 0x15d   :  { %1418 = vmatpush1.bf16.msra.mxu1 %v1784_v17  ;;  %1244 = vmatprep.mubr.f32.mxu1 %v1880_v24 }
 0x15e   :  { %1419 = vmatprep.subr.bf16.mxu1 %v1465_v4 }
 0x161   :  { %1421 = vmatpush1.bf16.msra.mxu1 %v1793_v3 }
 0x162   :  { %1422 = vmatprep.subr.bf16.mxu1 %v1465_v4 }
 0x165   :  { %1424 = vmatpush1.bf16.msra.mxu1 %v1801_v14 }
 0x166   :  { %1425 = vmatprep.subr.bf16.mxu1 %v1465_v4 }
 0x169   :  { %1427 = vmatpush1.bf16.msra.mxu1 %v1809_v18 }
 0x16a   :  { %1428 = vmatprep.subr.bf16.mxu1 %v1465_v4 }
 0x16d   :  { %1430 = vmatpush1.bf16.msra.mxu1 %v1817_v19 }
 0x16e   :  { %1431 = vmatprep.subr.bf16.mxu1 %v1465_v4 }
 0x171   :  { %1433 = vmatpush1.bf16.msra.mxu1 %v1823_v22 }
 0x172   :  { %1434 = vmatprep.subr.bf16.mxu1 %v1465_v4 }
 0x175   :  { %1436 = vmatpush1.bf16.msra.mxu1 %v1844_v41 }
 0x176   :  { %1437 = vmatprep.subr.bf16.mxu1 %v1465_v4 }
 0x179   :  { %1439 = vmatpush1.bf16.msra.mxu1 %v1849_v49 }
 0x17a   :  { %1440 = vmatprep.subr.bf16.mxu1 %v1465_v4 }
 0x17d   :  { %1442 = vmatpush1.bf16.msra.mxu1 %v1854_v50 }
 0x180   :  { %1246 = vmatmul.mubr.f32.vlgmr.msra.gmra.mrb[0].mxu1 %v1868_v7 }
 0x211   :  { %v827_v34 = vpop.f32.mrb[2].mxu0 }
 0x212   :  { %v829_v35 = vpop.f32.mrb[3].mxu0 }
 0x253   :  { %v1247_v51 = vpop.f32.mrb[0].mxu1 }
 0x254   :  { %v1443_v52 = vadd.f32 %v1247_v51, %v827_v34  ;;  %v1249_v17 = vpop.f32.mrb[1].mxu1 }
 0x256   :  { %1252 = vst.msk [vmem:[%s2017_s3] sm:$0x3f] %vm1251_vm3, %v1443_v52 }

</bundles_post_ra>
